<compile_context>
chip_gen: v7x
topology: tpu7x:2x2x1
jax: 0.10.0
libtpu: 0.0.40
codegen_flags: <defaults>
</compile_context>

<pallas_src>
import functools

import jax
import jax.numpy as jnp
from jax.experimental import pallas as pl
from jax.experimental.pallas import tpu as pltpu

LOG_SIG_MAX = 2.0
LOG_SIG_MIN = -20.0


def _round_up(x, m):
    return ((x + m - 1) // m) * m


def soft_actor_kernel(s_ref, w1_ref, b1_ref, w2_ref, b2_ref, wh_ref, bh_ref,
                      out_ref, *, a_pad):
    cdt = w1_ref.dtype  # compute dtype for MXU inputs (bf16)
    # a = relu(state @ W1 + b1)   (bf16 matmul, f32 accumulate)
    a = jnp.dot(s_ref[...], w1_ref[...], preferred_element_type=jnp.float32)
    a = jnp.maximum(a + b1_ref[...], 0.0).astype(cdt)
    # a = relu(a @ W2 + b2)
    a = jnp.dot(a, w2_ref[...], preferred_element_type=jnp.float32)
    a = jnp.maximum(a + b2_ref[...], 0.0).astype(cdt)
    # fused heads: [mean | log_std] in one matmul (lane-dense output slab)
    h = jnp.dot(a, wh_ref[...], preferred_element_type=jnp.float32) + bh_ref[...]
    # a_pad is a multiple of 128 -> both stores are unmasked, tile-aligned.
    out_ref[:, :a_pad] = h[:, :a_pad].astype(out_ref.dtype)
    out_ref[:, a_pad:] = jnp.clip(h[:, a_pad:],
                                  LOG_SIG_MIN, LOG_SIG_MAX).astype(out_ref.dtype)


def pad_soft_actor_params(params, compute_dtype=jnp.bfloat16):
    """Pad / fuse the weights ONCE at init (kept out of the per-call jit).

    Returns (w1_p, b1_p, w2_p, b2_p, wh_p, bh_p):
      * weights in `compute_dtype` (bf16), zero-padded to 128-lane multiples,
      * biases in float32 (added in the f32 accumulator inside the kernel),
      * the two heads fused as [mean | log_std], each padded to A_PAD lanes.
    """
    w1, b1, w2, b2, wm, bm, ws, bs = params
    state_dim, hidden_dim = w1.shape
    action_dim = wm.shape[1]

    S_PAD = _round_up(state_dim, 128)
    H_PAD = _round_up(hidden_dim, 128)
    A_PAD = _round_up(action_dim, 128)

    cdt = compute_dtype
    f32 = jnp.float32

    w1_p = jnp.zeros((S_PAD, H_PAD), cdt).at[:state_dim, :hidden_dim].set(
        w1.astype(cdt))
    b1_p = jnp.zeros((1, H_PAD), f32).at[:, :hidden_dim].set(b1.astype(f32))
    w2_p = jnp.zeros((H_PAD, H_PAD), cdt).at[:hidden_dim, :hidden_dim].set(
        w2.astype(cdt))
    b2_p = jnp.zeros((1, H_PAD), f32).at[:, :hidden_dim].set(b2.astype(f32))
    wh_p = (jnp.zeros((H_PAD, 2 * A_PAD), cdt)
            .at[:hidden_dim, :action_dim].set(wm.astype(cdt))
            .at[:hidden_dim, A_PAD:A_PAD + action_dim].set(ws.astype(cdt)))
    bh_p = (jnp.zeros((1, 2 * A_PAD), f32)
            .at[:, :action_dim].set(bm.astype(f32))
            .at[:, A_PAD:A_PAD + action_dim].set(bs.astype(f32)))
    return (w1_p, b1_p, w2_p, b2_p, wh_p, bh_p)


@functools.partial(jax.jit, static_argnames=("action_dim",))
def soft_actor_forward(state, padded_params, *, action_dim):
    """Returns (mean, log_std) exactly like SoftActor.forward.

    `padded_params` must come from `pad_soft_actor_params` (padding is done
    once at init, not per call). Only the state is padded here.
    """
    w1_p, b1_p, w2_p, b2_p, wh_p, bh_p = padded_params
    B, state_dim = state.shape
    S_PAD, H_PAD = w1_p.shape
    A_PAD = wh_p.shape[1] // 2
    cdt = w1_p.dtype

    # Batch tile: multiple of 8 sublanes, capped at 512 (>= ~85% of HBM
    # roofline per measured tiling sweeps). For larger batches make sure the
    # grid has >= 2 steps so the "parallel" axis can shard across v7x's two
    # TensorCores (harmless on single-TC v5e/v6e).
    TILE_B = min(512, _round_up(B, 8))
    if B >= 256 and _round_up(B, TILE_B) // TILE_B < 2:
        TILE_B = _round_up((B + 1) // 2, 8)
    B_PAD = _round_up(B, TILE_B)

    # Pad only the streamed state (zeros are exact no-ops through matmul+ReLU).
    state_p = jnp.zeros((B_PAD, S_PAD), cdt).at[:B, :state_dim].set(
        state.astype(cdt))

    grid = (B_PAD // TILE_B,)
    # Weights/biases use constant index_maps -> DMA'd once and VMEM-resident
    # across all batch tiles (Pallas skips re-fetch when the block index is
    # unchanged); state/output are streamed (double-buffered) per tile.
    weight_spec = lambda shape: pl.BlockSpec(shape, lambda i: (0, 0))

    # Size the scoped-VMEM limit from the actual footprint (2x for the
    # double-buffered pipeline) with headroom; covers v5e's 16 MiB scoped
    # default and stays under v7x's 64 MiB physical VMEM.
    elt = jnp.dtype(cdt).itemsize
    w_bytes = (S_PAD * H_PAD + H_PAD * H_PAD + H_PAD * 2 * A_PAD) * elt \
        + (2 * H_PAD + 2 * A_PAD) * 4
    tile_bytes = TILE_B * S_PAD * elt + TILE_B * 2 * A_PAD * 4
    vmem_limit = min(64 * 1024 * 1024,
                     max(16 * 1024 * 1024,
                         2 * (w_bytes + tile_bytes) + (4 << 20)))

    flops = 2 * B_PAD * (S_PAD * H_PAD + H_PAD * H_PAD + H_PAD * 2 * A_PAD)
    bytes_accessed = B_PAD * S_PAD * elt + B_PAD * 2 * A_PAD * 4 + w_bytes

    out = pl.pallas_call(
        functools.partial(soft_actor_kernel, a_pad=A_PAD),
        out_shape=jax.ShapeDtypeStruct((B_PAD, 2 * A_PAD), jnp.float32),
        grid=grid,
        in_specs=[
            pl.BlockSpec((TILE_B, S_PAD), lambda i: (i, 0)),   # state (streamed)
            weight_spec((S_PAD, H_PAD)),                       # w1 (resident)
            weight_spec((1, H_PAD)),                           # b1
            weight_spec((H_PAD, H_PAD)),                       # w2
            weight_spec((1, H_PAD)),                           # b2
            weight_spec((H_PAD, 2 * A_PAD)),                   # fused head W
            weight_spec((1, 2 * A_PAD)),                       # fused head b
        ],
        out_specs=pl.BlockSpec((TILE_B, 2 * A_PAD), lambda i: (i, 0)),
        compiler_params=pltpu.CompilerParams(
            dimension_semantics=("parallel",),
            vmem_limit_bytes=int(vmem_limit)),
        cost_estimate=pl.CostEstimate(
            flops=int(flops), transcendentals=0,
            bytes_accessed=int(bytes_accessed)),
    )(state_p, w1_p, b1_p, w2_p, b2_p, wh_p, bh_p)

    mean = out[:B, :action_dim]
    log_std = out[:B, A_PAD:A_PAD + action_dim]
    return mean, log_std


def init_soft_actor_params(key, state_dim, action_dim, hidden_dim):
    """Deterministic init mimicking torch.nn.Linear (U(-1/sqrt(fan_in), ...))."""
    def linear_init(k, fan_in, fan_out):
        kw, kb = jax.random.split(k)
        bound = 1.0 / jnp.sqrt(jnp.float32(fan_in))
        w = jax.random.uniform(kw, (fan_in, fan_out), jnp.float32, -bound, bound)
        b = jax.random.uniform(kb, (1, fan_out), jnp.float32, -bound, bound)
        return w, b

    k1, k2, k3, k4 = jax.random.split(key, 4)
    w1, b1 = linear_init(k1, state_dim, hidden_dim)
    w2, b2 = linear_init(k2, hidden_dim, hidden_dim)
    wm, bm = linear_init(k3, hidden_dim, action_dim)
    ws, bs = linear_init(k4, hidden_dim, action_dim)
    return (w1, b1, w2, b2, wm, bm, ws, bs)


def reference_forward(state, params):
    """Pure-JAX f32 reference for correctness checking."""
    w1, b1, w2, b2, wm, bm, ws, bs = params
    a = jnp.maximum(state @ w1 + b1, 0.0)
    a = jnp.maximum(a @ w2 + b2, 0.0)
    mean = a @ wm + bm
    log_std = jnp.clip(a @ ws + bs, LOG_SIG_MIN, LOG_SIG_MAX)
    return mean, log_std


if __name__ == "__main__":
    # Small shapes consistent with SoftActor.forward: state is (batch, state_dim).
    batch = 4
    state_dim = 16
    hidden_dim = 32
    action_dim = 8

    key = jax.random.PRNGKey(0)
    k_params, k_state = jax.random.split(key)

    params = init_soft_actor_params(k_params, state_dim, action_dim, hidden_dim)
    state = jax.random.normal(k_state, (batch, state_dim), dtype=jnp.float32)

    # Pad / fuse the weights ONCE at init; only the state is padded per call.
    padded_params = pad_soft_actor_params(params)
    jax.block_until_ready(padded_params)

    mean, log_std = soft_actor_forward(state, padded_params,
                                       action_dim=action_dim)
    jax.block_until_ready((mean, log_std))

    # Sanity check against a pure-JAX f32 reference (kernel matmuls are bf16
    # with f32 accumulation, so use a bf16-appropriate tolerance).
    ref_mean, ref_log_std = reference_forward(state, params)
    assert mean.shape == (batch, action_dim)
    assert log_std.shape == (batch, action_dim)
    assert jnp.allclose(mean, ref_mean, atol=5e-2, rtol=5e-2)
    assert jnp.allclose(log_std, ref_log_std, atol=5e-2, rtol=5e-2)

    # TODO(synk): SoftActor.sample()/act() (rsample, tanh squash, log_prob) are
    # stochastic sampling glue around forward(); only the deterministic forward
    # hot path is implemented in the kernel.
    print("KERNEL_OK")
</pallas_src>

<mosaic_0001>
module attributes {stable_mosaic.version = 11 : i64} {
  func.func @soft_actor_kernel(%arg0: i32, %arg1: memref<8x128xbf16, #tpu.memory_space<vmem>>, %arg2: memref<128x128xbf16, #tpu.memory_space<vmem>>, %arg3: memref<1x128xf32, #tpu.memory_space<vmem>>, %arg4: memref<128x128xbf16, #tpu.memory_space<vmem>>, %arg5: memref<1x128xf32, #tpu.memory_space<vmem>>, %arg6: memref<128x256xbf16, #tpu.memory_space<vmem>>, %arg7: memref<1x256xf32, #tpu.memory_space<vmem>>, %arg8: memref<8x256xf32, #tpu.memory_space<vmem>>) attributes {dimension_semantics = [#tpu.dimension_semantics<parallel>], iteration_bounds = array<i64: 1>, scalar_prefetch = 0 : i64, scratch_operands = 0 : i64, tpu.core_type = #tpu.core_type<tc>, window_params = [{transform_indices = @transform_0, window_bounds = array<i64: 8, 128>}, {pipeline_mode = #tpu.pipeline_mode<synchronous>, transform_indices = @transform_1, window_bounds = array<i64: 128, 128>}, {pipeline_mode = #tpu.pipeline_mode<synchronous>, transform_indices = @transform_2, window_bounds = array<i64: 1, 128>}, {pipeline_mode = #tpu.pipeline_mode<synchronous>, transform_indices = @transform_3, window_bounds = array<i64: 128, 128>}, {pipeline_mode = #tpu.pipeline_mode<synchronous>, transform_indices = @transform_4, window_bounds = array<i64: 1, 128>}, {pipeline_mode = #tpu.pipeline_mode<synchronous>, transform_indices = @transform_5, window_bounds = array<i64: 128, 256>}, {pipeline_mode = #tpu.pipeline_mode<synchronous>, transform_indices = @transform_6, window_bounds = array<i64: 1, 256>}, {transform_indices = @transform_7, window_bounds = array<i64: 8, 256>}]} {
    %c0 = arith.constant 0 : index
    %c0_0 = arith.constant 0 : index
    %0 = vector.load %arg1[%c0, %c0_0] : memref<8x128xbf16, #tpu.memory_space<vmem>>, vector<8x128xbf16>
    %c0_1 = arith.constant 0 : index
    %c0_2 = arith.constant 0 : index
    %1 = vector.load %arg2[%c0_1, %c0_2] : memref<128x128xbf16, #tpu.memory_space<vmem>>, vector<128x128xbf16>
    %cst = arith.constant dense<0.000000e+00> : vector<8x128xf32>
    %2 = tpu.matmul %0, %1, %cst {dimension_numbers = #tpu.dot_dimension_numbers<[1], [0], [0], [1], [0, 0, 1, 1], [], []>} : vector<8x128xbf16>, vector<128x128xbf16>, vector<8x128xf32> -> vector<8x128xf32>
    %c0_3 = arith.constant 0 : index
    %c0_4 = arith.constant 0 : index
    %3 = vector.load %arg3[%c0_3, %c0_4] : memref<1x128xf32, #tpu.memory_space<vmem>>, vector<1x128xf32>
    %4 = vector.broadcast %3 : vector<1x128xf32> to vector<8x128xf32>
    %5 = arith.addf %2, %4 : vector<8x128xf32>
    %cst_5 = arith.constant 0.000000e+00 : f32
    %6 = vector.broadcast %cst_5 : f32 to vector<8x128xf32>
    %7 = arith.maximumf %5, %6 : vector<8x128xf32>
    %8 = arith.truncf %7 : vector<8x128xf32> to vector<8x128xbf16>
    %c0_6 = arith.constant 0 : index
    %c0_7 = arith.constant 0 : index
    %9 = vector.load %arg4[%c0_6, %c0_7] : memref<128x128xbf16, #tpu.memory_space<vmem>>, vector<128x128xbf16>
    %cst_8 = arith.constant dense<0.000000e+00> : vector<8x128xf32>
    %10 = tpu.matmul %8, %9, %cst_8 {dimension_numbers = #tpu.dot_dimension_numbers<[1], [0], [0], [1], [0, 0, 1, 1], [], []>} : vector<8x128xbf16>, vector<128x128xbf16>, vector<8x128xf32> -> vector<8x128xf32>
    %c0_9 = arith.constant 0 : index
    %c0_10 = arith.constant 0 : index
    %11 = vector.load %arg5[%c0_9, %c0_10] : memref<1x128xf32, #tpu.memory_space<vmem>>, vector<1x128xf32>
    %12 = vector.broadcast %11 : vector<1x128xf32> to vector<8x128xf32>
    %13 = arith.addf %10, %12 : vector<8x128xf32>
    %cst_11 = arith.constant 0.000000e+00 : f32
    %14 = vector.broadcast %cst_11 : f32 to vector<8x128xf32>
    %15 = arith.maximumf %13, %14 : vector<8x128xf32>
    %16 = arith.truncf %15 : vector<8x128xf32> to vector<8x128xbf16>
    %c0_12 = arith.constant 0 : index
    %c0_13 = arith.constant 0 : index
    %17 = vector.load %arg6[%c0_12, %c0_13] : memref<128x256xbf16, #tpu.memory_space<vmem>>, vector<128x256xbf16>
    %cst_14 = arith.constant dense<0.000000e+00> : vector<8x256xf32>
    %18 = tpu.matmul %16, %17, %cst_14 {dimension_numbers = #tpu.dot_dimension_numbers<[1], [0], [0], [1], [0, 0, 1, 1], [], []>} : vector<8x128xbf16>, vector<128x256xbf16>, vector<8x256xf32> -> vector<8x256xf32>
    %c0_15 = arith.constant 0 : index
    %c0_16 = arith.constant 0 : index
    %19 = vector.load %arg7[%c0_15, %c0_16] : memref<1x256xf32, #tpu.memory_space<vmem>>, vector<1x256xf32>
    %20 = vector.broadcast %19 : vector<1x256xf32> to vector<8x256xf32>
    %21 = arith.addf %18, %20 : vector<8x256xf32>
    %22 = vector.extract_strided_slice %21 {offsets = [0, 0], sizes = [8, 128], strides = [1, 1]} : vector<8x256xf32> to vector<8x128xf32>
    %c0_17 = arith.constant 0 : index
    %c0_18 = arith.constant 0 : index
    %23 = vector.load %arg8[%c0_17, %c0_18] : memref<8x256xf32, #tpu.memory_space<vmem>>, vector<8x128xf32>
    tpu.vector_store %arg8[%c0_17, %c0_18], %22 {strides = array<i32>} : memref<8x256xf32, #tpu.memory_space<vmem>>, vector<8x128xf32>,
    %24 = vector.extract_strided_slice %21 {offsets = [0, 128], sizes = [8, 128], strides = [1, 1]} : vector<8x256xf32> to vector<8x128xf32>
    %cst_19 = arith.constant -2.000000e+01 : f32
    %cst_20 = arith.constant 2.000000e+00 : f32
    %25 = vector.broadcast %cst_19 : f32 to vector<8x128xf32>
    %26 = arith.maximumf %25, %24 : vector<8x128xf32>
    %27 = vector.broadcast %cst_20 : f32 to vector<8x128xf32>
    %28 = arith.minimumf %27, %26 : vector<8x128xf32>
    %c0_21 = arith.constant 0 : index
    %c128 = arith.constant 128 : index
    %29 = vector.load %arg8[%c0_21, %c128] : memref<8x256xf32, #tpu.memory_space<vmem>>, vector<8x128xf32>
    tpu.vector_store %arg8[%c0_21, %c128], %28 {strides = array<i32>} : memref<8x256xf32, #tpu.memory_space<vmem>>, vector<8x128xf32>,
    return
  }
  func.func @transform_0(%arg0: i32) -> (i32, i32) {
    %c0_i32 = arith.constant 0 : i32
    %c0_i32_0 = arith.constant 0 : i32
    return %arg0, %c0_i32 : i32, i32
  }
  func.func @transform_1(%arg0: i32) -> (i32, i32) {
    %c0_i32 = arith.constant 0 : i32
    %c0_i32_0 = arith.constant 0 : i32
    %c0_i32_1 = arith.constant 0 : i32
    return %c0_i32, %c0_i32_0 : i32, i32
  }
  func.func @transform_2(%arg0: i32) -> (i32, i32) {
    %c0_i32 = arith.constant 0 : i32
    %c0_i32_0 = arith.constant 0 : i32
    %c0_i32_1 = arith.constant 0 : i32
    return %c0_i32, %c0_i32_0 : i32, i32
  }
  func.func @transform_3(%arg0: i32) -> (i32, i32) {
    %c0_i32 = arith.constant 0 : i32
    %c0_i32_0 = arith.constant 0 : i32
    %c0_i32_1 = arith.constant 0 : i32
    return %c0_i32, %c0_i32_0 : i32, i32
  }
  func.func @transform_4(%arg0: i32) -> (i32, i32) {
    %c0_i32 = arith.constant 0 : i32
    %c0_i32_0 = arith.constant 0 : i32
    %c0_i32_1 = arith.constant 0 : i32
    return %c0_i32, %c0_i32_0 : i32, i32
  }
  func.func @transform_5(%arg0: i32) -> (i32, i32) {
    %c0_i32 = arith.constant 0 : i32
    %c0_i32_0 = arith.constant 0 : i32
    %c0_i32_1 = arith.constant 0 : i32
    return %c0_i32, %c0_i32_0 : i32, i32
  }
  func.func @transform_6(%arg0: i32) -> (i32, i32) {
    %c0_i32 = arith.constant 0 : i32
    %c0_i32_0 = arith.constant 0 : i32
    %c0_i32_1 = arith.constant 0 : i32
    return %c0_i32, %c0_i32_0 : i32, i32
  }
  func.func @transform_7(%arg0: i32) -> (i32, i32) {
    %c0_i32 = arith.constant 0 : i32
    %c0_i32_0 = arith.constant 0 : i32
    return %arg0, %c0_i32 : i32, i32
  }
}

</mosaic_0001>

<bundles_post_ra>
// kernel: soft_actor_forward.1
= control target key start
LH: loop header
LB: loop body
LE: loop exit
PB: predicated region body
PF: predicated region fallthrough
CT: control target
= control target key end

     0   :  { %12 = vsyncpa [#allocation3], 0  ;;  %s777_s0 = inlined_call_operand.vmem [shape: bf16[8,128], index: 0, kind: input, shape index: {}]   ;;  %s778_s1 = inlined_call_operand.hbm [shape: bf16[128,128], index: 1, kind: input, shape index: {}]   ;;  %s779_s2 = inlined_call_operand.vmem [shape: f32[1,128], index: 2, kind: input, shape index: {}]   ;;  %s780_s3 = inlined_call_operand.hbm [shape: bf16[128,128], index: 3, kind: input, shape index: {}]   ;;  %s781_s4 = inlined_call_operand.vmem [shape: f32[1,128], index: 4, kind: input, shape index: {}]   ;;  %s782_s5 = inlined_call_operand.hbm [shape: bf16[128,256], index: 5, kind: input, shape index: {}]   ;;  %s783_s6 = inlined_call_operand.vmem [shape: f32[1,256], index: 6, kind: input, shape index: {}]   ;;  %s784_s7 = inlined_call_operand.vmem [shape: f32[8,256], index: 7, kind: output, shape index: {}]  }
   0x1   :  { %13 = vsyncpa [#allocation5], 0  ;;  %s666_s24 = smov [#allocation4]   ;;  %s667_s26 = smov [#allocation2]  }
   0x2   :  { %s35_s25 = sshll.u32 %s666_s24, 4  ;;  %s21_s27 = sshll.u32 %s667_s26, 4  ;;  %s36_s25 = int_to_ptr.vmem [resolvable:$true] %s35_s25  ;;  %s716_s27 = int_to_ptr.vmem [resolvable:$true] %s21_s27 }
   0x3   :  { %s596_s30 = scalar_lea.hbm %s780_s3, 1024 }
   0x4   :  { %p597_p0 = scmp.ne.s32.totalorder %s780_s3, %s596_s30  ;;  %p600_p1 = scmp.lt.u32.totalorder %s596_s30, %s780_s3 }
   0x6   :  { %p602_p2 = pnand %p600_p1, %p597_p0 }
   0x8   :  { %605 = shalt.err (!%p602_p2)
}
   0x9   :  { %s606_s12 = scalar_lea.vmem %s36_s25, 1024  ;;  %p611_p4 = scmp.lt.s32.totalorder %s36_s25, %s36_s25 }
   0xa   :  { %p607_p3 = scmp.ne.s32.totalorder %s36_s25, %s606_s12  ;;  %p612_p5 = scmp.lt.s32.totalorder %s606_s12, %s606_s12 }
   0xc   :  { %p613_p6 = por %p612_p5, %p611_p4 }
   0xe   :  { %p614_p7 = pnand %p613_p6, %p607_p3 }
  0x10   :  { %617 = shalt.err (!%p614_p7)
}
  0x11   :  { %s668_s13 = smov 64   ;;  %s669_s14 = smov 4  }
  0x12   :  { %41 = dma.hbm_to_vmem [thread:$0]  %s780_s3, 1024, %s36_s25, [#allocation5], %s668_s13, %s668_s13, %s669_s14  }
  0x13   :  { %s618_s19 = scalar_lea.hbm %s778_s1, 1024 }
  0x14   :  { %p619_p8 = scmp.ne.s32.totalorder %s778_s1, %s618_s19  ;;  %p622_p9 = scmp.lt.u32.totalorder %s618_s19, %s778_s1 }
  0x16   :  { %p624_p10 = pnand %p622_p9, %p619_p8 }
  0x18   :  { %627 = shalt.err (!%p624_p10)
}
  0x19   :  { %s628_s24 = scalar_lea.vmem %s716_s27, 1024  ;;  %p633_p12 = scmp.lt.s32.totalorder %s716_s27, %s716_s27 }
  0x1a   :  { %p629_p11 = scmp.ne.s32.totalorder %s716_s27, %s628_s24  ;;  %p634_p13 = scmp.lt.s32.totalorder %s628_s24, %s628_s24 }
  0x1c   :  { %p635_p0 = por %p634_p13, %p633_p12 }
  0x1e   :  { %p636_p1 = pnand %p635_p0, %p629_p11 }
  0x20   :  { %639 = shalt.err (!%p636_p1)
}
  0x21   :  { %27 = dma.hbm_to_vmem [thread:$0]  %s778_s1, 1024, %s716_s27, [#allocation3], %s668_s13, %s668_s13, %s669_s14  }
  0x22   :  { %s670_s26 = smov [#allocation6]   ;;  %s640_s8 = scalar_lea.hbm %s782_s5, 2048 }
  0x23   :  { %s49_s28 = sshll.u32 %s670_s26, 4  ;;  %p641_p2 = scmp.ne.s32.totalorder %s782_s5, %s640_s8  ;;  %s50_s28 = int_to_ptr.vmem [resolvable:$true] %s49_s28 }
  0x24   :  { %p644_p3 = scmp.lt.u32.totalorder %s640_s8, %s782_s5 }
  0x26   :  { %p646_p4 = pnand %p644_p3, %p641_p2 }
  0x28   :  { %649 = shalt.err (!%p646_p4)
}
  0x29   :  { %s650_s15 = scalar_lea.vmem %s50_s28, 2048  ;;  %p655_p6 = scmp.lt.s32.totalorder %s50_s28, %s50_s28 }
  0x2a   :  { %p651_p5 = scmp.ne.s32.totalorder %s50_s28, %s650_s15  ;;  %p656_p7 = scmp.lt.s32.totalorder %s650_s15, %s650_s15 }
  0x2c   :  { %p657_p8 = por %p656_p7, %p655_p6 }
  0x2e   :  { %p658_p9 = pnand %p657_p8, %p651_p5 }
  0x30   :  { %661 = shalt.err (!%p658_p9)
}
  0x31   :  { %s671_s1 = smov 128   ;;  %s672_s27 = smov 8  }
  0x32   :  { %55 = dma.hbm_to_vmem [thread:$0]  %s782_s5, 2048, %s50_s28, [#allocation5], %s671_s1, %s671_s1, %s672_s27  }
  0x33   :  { %662 = dma.done.wait [#allocation3], 1024  }
  0x34   :  { %663 = vsyncadd [#allocation3], 4294966272 }
  0x35   :  { %664 = dma.done.wait [#allocation5], 3072  }
  0x36   :  { %665 = vsyncadd [#allocation5], 4294964224  ;;  %v673_v0 = vmov 0.0   ;;  %vm674_vm0 = vmmov 0   ;;  %v556_v1 = vld [vmem:[#allocation2] sm:$0xff]   ;;  %v557_v2 = vld [vmem:[#allocation2 + $0x8] sm:$0xff]   ;;  %v313_v51 = vlaneseq }
  0x37   :  { %506 = vmatprep.subr.bf16.mxu0 %v673_v0  ;;  %522 = vmatprep.mubr.msk.bf16.mxu0 %vm674_vm0, %v673_v0  ;;  %v558_v3 = vld [vmem:[#allocation2 + $0x10] sm:$0xff]   ;;  %v564_v4 = vld [vmem:[#allocation4] sm:$0xff]   ;;  %v559_v5 = vld [vmem:[#allocation2 + $0x18] sm:$0xff]   ;;  %v675_v42 = vmov 0  }
  0x38   :  { %526 = vmatprep.subr.bf16.mxu1 %v673_v0  ;;  %542 = vmatprep.mubr.msk.bf16.mxu1 %vm674_vm0, %v673_v0  ;;  %v565_v6 = vld [vmem:[#allocation4 + $0x8] sm:$0xff]   ;;  %v560_v7 = vld [vmem:[#allocation2 + $0x20] sm:$0xff]   ;;  %v566_v8 = vld [vmem:[#allocation4 + $0x10] sm:$0xff]   ;;  %v314_v52 = vshrl.u32 %v313_v51, 7 }
  0x39   :  { %507 = vmatpush3.bf16.msra.mxu0 %v556_v1  ;;  %527 = vmatpush3.bf16.msra.mxu1 %v564_v4  ;;  %v561_v9 = vld [vmem:[#allocation2 + $0x28] sm:$0xff]   ;;  %v567_v10 = vld [vmem:[#allocation4 + $0x18] sm:$0xff]   ;;  %v562_v11 = vld [vmem:[#allocation2 + $0x30] sm:$0xff]  }
  0x3a   :  { %508 = vmatprep.subr.bf16.mxu0 %v673_v0  ;;  %528 = vmatprep.subr.bf16.mxu1 %v673_v0  ;;  %v568_v12 = vld [vmem:[#allocation4 + $0x20] sm:$0xff]   ;;  %v563_v13 = vld [vmem:[#allocation2 + $0x38] sm:$0xff]   ;;  %v569_v14 = vld [vmem:[#allocation4 + $0x28] sm:$0xff]   ;;  %v315_v53 = vsub.s32 0, %v314_v52  ;;  %v319_v55 = vsub.s32 1, %v314_v52 }
  0x3b   :  { %v68_v15 = vld [vmem:[%s777_s0] sm:$0xf]  ;;  %v570_v16 = vld [vmem:[#allocation4 + $0x30] sm:$0xff]   ;;  %v571_v17 = vld [vmem:[#allocation4 + $0x38] sm:$0xff]  }
  0x3c   :  { %v572_v18 = vld [vmem:[#allocation6] ss:$8 sps:$4 sm:$0xff]   ;;  %v574_v19 = vld [vmem:[#allocation6 + $0x4] ss:$8 sps:$4 sm:$0xff]   ;;  %v577_v20 = vld [vmem:[#allocation6 + $0x14] ss:$8 sps:$4 sm:$0xff]  }
  0x3d   :  { %509 = vmatpush3.bf16.msra.mxu0 %v557_v2  ;;  %529 = vmatpush3.bf16.msra.mxu1 %v565_v6  ;;  %v575_v21 = vld [vmem:[#allocation6 + $0x10] ss:$8 sps:$4 sm:$0xff]   ;;  %v580_v22 = vld [vmem:[#allocation6 + $0x24] ss:$8 sps:$4 sm:$0xff]   ;;  %v578_v23 = vld [vmem:[#allocation6 + $0x20] ss:$8 sps:$4 sm:$0xff]  }
  0x3e   :  { %510 = vmatprep.subr.bf16.mxu0 %v673_v0  ;;  %530 = vmatprep.subr.bf16.mxu1 %v673_v0  ;;  %v583_v24 = vld [vmem:[#allocation6 + $0x34] ss:$8 sps:$4 sm:$0xff]   ;;  %v581_v25 = vld [vmem:[#allocation6 + $0x30] ss:$8 sps:$4 sm:$0xff]   ;;  %v586_v26 = vld [vmem:[#allocation6 + $0x44] ss:$8 sps:$4 sm:$0xff]  }
  0x3f   :  { %v584_v27 = vld [vmem:[#allocation6 + $0x40] ss:$8 sps:$4 sm:$0xff]   ;;  %v589_v28 = vld [vmem:[#allocation6 + $0x54] ss:$8 sps:$4 sm:$0xff]   ;;  %v587_v29 = vld [vmem:[#allocation6 + $0x50] ss:$8 sps:$4 sm:$0xff]  }
  0x40   :  { %v592_v30 = vld [vmem:[#allocation6 + $0x64] ss:$8 sps:$4 sm:$0xff]   ;;  %v590_v31 = vld [vmem:[#allocation6 + $0x60] ss:$8 sps:$4 sm:$0xff]   ;;  %v595_v40 = vld [vmem:[#allocation6 + $0x74] ss:$8 sps:$4 sm:$0xff]  }
  0x41   :  { %511 = vmatpush3.bf16.msra.mxu0 %v558_v3  ;;  %531 = vmatpush3.bf16.msra.mxu1 %v566_v8  ;;  %v454_v32 = vld [vmem:[%s779_s2] ss:$0 sm:$0xff]  ;;  %v593_v41 = vld [vmem:[#allocation6 + $0x70] ss:$8 sps:$4 sm:$0xff]  }
  0x42   :  { %512 = vmatprep.subr.bf16.mxu0 %v673_v0  ;;  %532 = vmatprep.subr.bf16.mxu1 %v673_v0  ;;  %v463_v43 = vld [vmem:[%s781_s4] ss:$0 sm:$0xff] }
  0x43   :  { %v311_v54 = vld [vmem:[%s783_s6] sm:$0x3] }
  0x44   :  { %v316_v56 = vrot.slane %v311_v54, %v315_v53  ;;  %v320_v57 = vrot.slane %v311_v54, %v319_v55 }
  0x45   :  { %513 = vmatpush3.bf16.msra.mxu0 %v559_v5  ;;  %533 = vmatpush3.bf16.msra.mxu1 %v567_v10 }
  0x46   :  { %514 = vmatprep.subr.bf16.mxu0 %v673_v0  ;;  %534 = vmatprep.subr.bf16.mxu1 %v673_v0 }
  0x49   :  { %515 = vmatpush3.bf16.msra.mxu0 %v560_v7  ;;  %535 = vmatpush3.bf16.msra.mxu1 %v568_v12 }
  0x4a   :  { %516 = vmatprep.subr.bf16.mxu0 %v673_v0  ;;  %536 = vmatprep.subr.bf16.mxu1 %v673_v0 }
  0x4d   :  { %517 = vmatpush3.bf16.msra.mxu0 %v561_v9  ;;  %537 = vmatpush3.bf16.msra.mxu1 %v569_v14 }
  0x4e   :  { %518 = vmatprep.subr.bf16.mxu0 %v673_v0  ;;  %538 = vmatprep.subr.bf16.mxu1 %v673_v0 }
  0x51   :  { %519 = vmatpush3.bf16.msra.mxu0 %v562_v11  ;;  %539 = vmatpush3.bf16.msra.mxu1 %v570_v16 }
  0x52   :  { %520 = vmatprep.subr.bf16.mxu0 %v673_v0  ;;  %540 = vmatprep.subr.bf16.mxu1 %v673_v0 }
  0x55   :  { %521 = vmatpush3.bf16.msra.mxu0 %v563_v13  ;;  %541 = vmatpush3.bf16.msra.mxu1 %v571_v17 }
  0x56   :  { %403 = vmatprep.subr.bf16.mxu0 %v574_v19 }
  0x58   :  { %523 = vmatmul.mubr.bf16.vlgmr.msra.gmra.mrb[0].mxu0 %v68_v15 }
  0x59   :  { %404 = vmatpush1.bf16.msra.mxu0 %v572_v18  ;;  %435 = vmatprep.mubr.bf16.mxu0 %v675_v42 }
  0x5a   :  { %405 = vmatprep.subr.bf16.mxu0 %v577_v20 }
  0x5d   :  { %406 = vmatpush1.bf16.msra.mxu0 %v575_v21 }
  0x5e   :  { %407 = vmatprep.subr.bf16.mxu0 %v580_v22 }
  0x61   :  { %408 = vmatpush1.bf16.msra.mxu0 %v578_v23 }
  0x62   :  { %409 = vmatprep.subr.bf16.mxu0 %v583_v24 }
  0x65   :  { %410 = vmatpush1.bf16.msra.mxu0 %v581_v25 }
  0x66   :  { %411 = vmatprep.subr.bf16.mxu0 %v586_v26 }
  0x69   :  { %412 = vmatpush1.bf16.msra.mxu0 %v584_v27 }
  0x6a   :  { %413 = vmatprep.subr.bf16.mxu0 %v589_v28 }
  0x6d   :  { %414 = vmatpush1.bf16.msra.mxu0 %v587_v29 }
  0x6e   :  { %415 = vmatprep.subr.bf16.mxu0 %v592_v30 }
  0x71   :  { %416 = vmatpush1.bf16.msra.mxu0 %v590_v31 }
  0x72   :  { %417 = vmatprep.subr.bf16.mxu0 %v595_v40 }
  0x75   :  { %418 = vmatpush1.bf16.msra.mxu0 %v593_v41 }
 0x12b   :  { %v174_v33 = vpop.f32.mrb[0].mxu0 }
 0x12c   :  { %v175_v34 = vadd.f32 %v454_v32, %v174_v33  ;;  %v524_v35 = vpop.f32.mrb[1].mxu0 }
 0x12d   :  { %v177_v36 = vpop.f32.mrb[2].mxu0 }
 0x12e   :  { %v180_v37 = vmax.f32 %v175_v34, 0.0  ;;  %v525_v38 = vpop.f32.mrb[3].mxu0 }
 0x130   :  { %v181_v39 = vpack.c.bf16 %v180_v37, %v180_v37 }
 0x132   :  { %543 = vmatmul.mubr.bf16.vlgmr.msra.gmra.mrb[0].mxu1 %v181_v39 }
 0x205   :  { %v287_v44 = vpop.f32.mrb[0].mxu1 }
 0x206   :  { %v288_v45 = vadd.f32 %v463_v43, %v287_v44  ;;  %v544_v46 = vpop.f32.mrb[1].mxu1 }
 0x207   :  { %v290_v47 = vpop.f32.mrb[2].mxu1 }
 0x208   :  { %v293_v48 = vmax.f32 %v288_v45, 0.0  ;;  %v545_v49 = vpop.f32.mrb[3].mxu1 }
 0x20a   :  { %v294_v50 = vpack.c.bf16 %v293_v48, %v293_v48 }
 0x20c   :  { %436 = vmatmul.mubr.bf16.vlgmr.msra.gmra.mrb[4].mxu0 %v294_v50 }
 0x2df   :  { %v437_v58 = vpop.f32.mrb[4].mxu0 }
 0x2e0   :  { %v438_v59 = vadd.f32 %v437_v58, %v316_v56  ;;  %v439_v60 = vpop.f32.mrb[5].mxu0 }
 0x2e1   :  { %v440_v61 = vadd.f32 %v439_v60, %v320_v57  ;;  %v441_v62 = vpop.f32.mrb[6].mxu0 }
 0x2e2   :  { %444 = vst [vmem:[%s784_s7] sm:$0xff] %v438_v59  ;;  %v442_v63 = vpop.f32.mrb[7].mxu0 }
 0x2e3   :  { %v445_v0 = vmax.f32 %v440_v61, -20.0 }
 0x2e5   :  { %v446_v1 = vmin.f32 %v445_v0, 2.0 }
 0x2e7   :  { %447 = vst [vmem:[%s784_s7 + $0x8] sm:$0xff] %v446_v1 }
 0x2e8   :  { %452 = vsyncpa [#allocation3], 1 }
 0x2e9   :  { %453 = vsyncpa [#allocation5], 1 }

</bundles_post_ra>
